<compile_context>
chip_gen: v7x
topology: tpu7x:2x2x1
jax: 0.10.0
libtpu: 0.0.40
codegen_flags: <defaults>
</compile_context>

<pallas_src>
import jax
import jax.numpy as jnp
from jax.experimental import pallas as pl
from jax.experimental.pallas import tpu as pltpu


def _latent_kernel(z_ref, cl_ref, z_out_ref, cl_out_ref):
    # --- clip(z, -2, 2): pure VPU elementwise -------------------------------
    z_out_ref[...] = jnp.clip(z_ref[...], -2.0, 2.0)

    # --- softmax(class_labels, axis=1), numerically stable, f32 math --------
    logits = cl_ref[...].astype(jnp.float32)
    m = jnp.max(logits, axis=-1, keepdims=True)
    e = jnp.exp(logits - m)
    denom = jnp.sum(e, axis=-1, keepdims=True)
    # Exact division: denom is only (rows, 1), so this costs ~nothing and the
    # rows sum to 1.0 exactly (vs ~2^-12 error with the approx reciprocal).
    cl_out_ref[...] = (e / denom).astype(cl_out_ref.dtype)


def _round_up_128(n):
    return ((n + 127) // 128) * 128


def _vmem_capacity_bytes():
    # Trace-time hardware query; fall back to the most constrained chip (v7x,
    # 64 MiB per TensorCore) if the query is unavailable.
    try:
        return int(pltpu.get_tpu_info().vmem_capacity_bytes)
    except Exception:
        return 64 * 1024 * 1024


def _derive_batch_tile(batch, dim_z, num_classes, z_itemsize, cl_itemsize, vmem_bytes):
    # Per-row VMEM footprint (lane-padded), double-buffered inputs + outputs,
    # plus ~2 f32 class-width temporaries (logits, e) inside the kernel.
    row_bytes = 2 * 2 * (
        _round_up_128(dim_z) * z_itemsize + _round_up_128(num_classes) * cl_itemsize
    )
    row_bytes += 2 * _round_up_128(num_classes) * 4
    budget = vmem_bytes // 2  # headroom for compiler scratch / spills
    tb = budget // max(row_bytes, 1)
    # Aim for >= 4 grid steps so read/write DMAs overlap; cap tile size so the
    # per-step ~0.35 us overhead stays amortized but DMAs stay long.
    tb = min(tb, 2048, -(-batch // 4))
    tb = max(8, (tb // 8) * 8)
    return int(tb)


def biggan_latent_forward(z, class_labels):
    """clip(z, -2, 2) + row-softmax(class_labels) in one Pallas TPU kernel."""
    batch, dim_z = z.shape
    cbatch, num_classes = class_labels.shape
    assert cbatch == batch, "z and class_labels must share the batch dim"

    out_shape = (
        jax.ShapeDtypeStruct((batch, dim_z), z.dtype),
        jax.ShapeDtypeStruct((batch, num_classes), class_labels.dtype),
    )

    z_itemsize = jnp.dtype(z.dtype).itemsize
    cl_itemsize = jnp.dtype(class_labels.dtype).itemsize
    total_bytes = 2 * batch * (dim_z * z_itemsize + num_classes * cl_itemsize)

    # Tiny inputs: gridless (whole arrays as single VMEM blocks) avoids the
    # pipelined-grid prologue/epilogue. Anything larger streams through the
    # batch-tiled auto-pipeline so DMAs overlap (and v7x shards across 2 TCs).
    _GRIDLESS_BYTES = 512 * 1024
    if total_bytes <= _GRIDLESS_BYTES:
        return pl.pallas_call(
            _latent_kernel,
            out_shape=out_shape,
            in_specs=[
                pl.BlockSpec(memory_space=pltpu.MemorySpace.VMEM),
                pl.BlockSpec(memory_space=pltpu.MemorySpace.VMEM),
            ],
            out_specs=(
                pl.BlockSpec(memory_space=pltpu.MemorySpace.VMEM),
                pl.BlockSpec(memory_space=pltpu.MemorySpace.VMEM),
            ),
        )(z, class_labels)

    vmem_bytes = _vmem_capacity_bytes()
    tb = _derive_batch_tile(batch, dim_z, num_classes, z_itemsize, cl_itemsize, vmem_bytes)
    grid = (pl.cdiv(batch, tb),)
    # ~48 MiB on v7x (64 MiB physical), ~96 MiB on v5e/v6e (128 MiB physical).
    vmem_limit = int(min(vmem_bytes * 3 // 4, 96 * 1024 * 1024))

    return pl.pallas_call(
        _latent_kernel,
        out_shape=out_shape,
        grid=grid,
        in_specs=[
            # Last-dim blocks are the full array dims -> (8,128)-rule satisfied
            # even for non-multiple-of-128 class widths; no padding needed.
            pl.BlockSpec((tb, dim_z), lambda i: (i, 0)),
            pl.BlockSpec((tb, num_classes), lambda i: (i, 0)),
        ],
        out_specs=(
            pl.BlockSpec((tb, dim_z), lambda i: (i, 0)),
            pl.BlockSpec((tb, num_classes), lambda i: (i, 0)),
        ),
        compiler_params=pltpu.CompilerParams(
            dimension_semantics=("parallel",),
            vmem_limit_bytes=vmem_limit,
        ),
    )(z, class_labels)


def _truncated_noise_sample(key, batch_size, dim_z, truncation=1.0):
    # Deterministic stand-in for scipy truncnorm(-2, 2) used by the original:
    # sample normal, clip to [-2, 2], scale by truncation.
    n = jax.random.normal(key, (batch_size, dim_z), dtype=jnp.float32)
    return truncation * jnp.clip(n, -2.0, 2.0)


def _check(z_param, cls_param, z_out, cls_out):
    z_ref = jnp.clip(z_param, -2.0, 2.0)
    cls_ref = jax.nn.softmax(cls_param, axis=1)
    assert z_out.shape == z_ref.shape and cls_out.shape == cls_ref.shape
    assert jnp.allclose(z_out, z_ref, atol=1e-6), "z clip mismatch"
    assert jnp.allclose(cls_out, cls_ref, atol=1e-5, rtol=1e-5), "softmax mismatch"
    assert jnp.allclose(jnp.sum(cls_out, axis=1), 1.0, atol=1e-5)


if __name__ == "__main__":
    key = jax.random.PRNGKey(0)
    k_z, k_cls, k_z2, k_cls2 = jax.random.split(key, 4)

    fwd = jax.jit(biggan_latent_forward)

    # --- small, module-consistent shapes (gridless path) --------------------
    batch_size, dim_z, num_classes = 2, 128, 16
    # Deterministic "parameters" (matching __init__ shapes); scale z so the
    # clip at +/-2 is actually exercised.
    z_param = 3.0 * _truncated_noise_sample(k_z, batch_size, dim_z)
    class_labels_param = jax.random.uniform(
        k_cls, (batch_size, num_classes), dtype=jnp.float32
    )
    z_out, cls_out = fwd(z_param, class_labels_param)
    jax.block_until_ready((z_out, cls_out))
    _check(z_param, class_labels_param, z_out, cls_out)

    # --- larger batch to exercise the batch-tiled, pipelined path -----------
    big_batch, big_classes = 4096, 144
    z_big = 3.0 * _truncated_noise_sample(k_z2, big_batch, dim_z)
    cls_big = jax.random.uniform(k_cls2, (big_batch, big_classes), dtype=jnp.float32)
    z_out_b, cls_out_b = fwd(z_big, cls_big)
    jax.block_until_ready((z_out_b, cls_out_b))
    _check(z_big, cls_big, z_out_b, cls_out_b)

    print("KERNEL_OK")
</pallas_src>

<mosaic_0001>
module attributes {stable_mosaic.version = 11 : i64} {
  func.func @_latent_kernel(%arg0: memref<2x128xf32, #tpu.memory_space<vmem>>, %arg1: memref<2x16xf32, #tpu.memory_space<vmem>>, %arg2: memref<2x128xf32, #tpu.memory_space<vmem>>, %arg3: memref<2x16xf32, #tpu.memory_space<vmem>>) attributes {dimension_semantics = [], scalar_prefetch = 0 : i64, scratch_operands = 0 : i64, tpu.core_type = #tpu.core_type<tc>} {
    %c0 = arith.constant 0 : index
    %c0_0 = arith.constant 0 : index
    %0 = vector.load %arg0[%c0, %c0_0] : memref<2x128xf32, #tpu.memory_space<vmem>>, vector<2x128xf32>
    %cst = arith.constant -2.000000e+00 : f32
    %cst_1 = arith.constant 2.000000e+00 : f32
    %1 = vector.broadcast %cst : f32 to vector<2x128xf32>
    %2 = arith.maximumf %1, %0 : vector<2x128xf32>
    %3 = vector.broadcast %cst_1 : f32 to vector<2x128xf32>
    %4 = arith.minimumf %3, %2 : vector<2x128xf32>
    %c0_2 = arith.constant 0 : index
    %c0_3 = arith.constant 0 : index
    %5 = vector.load %arg2[%c0_2, %c0_3] : memref<2x128xf32, #tpu.memory_space<vmem>>, vector<2x128xf32>
    tpu.vector_store %arg2[%c0_2, %c0_3], %4 {strides = array<i32>} : memref<2x128xf32, #tpu.memory_space<vmem>>, vector<2x128xf32>,
    %c0_4 = arith.constant 0 : index
    %c0_5 = arith.constant 0 : index
    %6 = vector.load %arg1[%c0_4, %c0_5] : memref<2x16xf32, #tpu.memory_space<vmem>>, vector<2x16xf32>
    %cst_6 = arith.constant dense<0xFF800000> : vector<2xf32>
    %7 = vector.multi_reduction <maximumf>, %6, %cst_6 [1] : vector<2x16xf32> to vector<2xf32>
    %8 = vector.shape_cast %7 : vector<2xf32> to vector<2x1xf32>
    %9 = vector.broadcast %8 : vector<2x1xf32> to vector<2x16xf32>
    %10 = arith.subf %6, %9 : vector<2x16xf32>
    %11 = math.exp %10 : vector<2x16xf32>
    %cst_7 = arith.constant dense<0.000000e+00> : vector<2xf32>
    %12 = vector.multi_reduction <add>, %11, %cst_7 [1] : vector<2x16xf32> to vector<2xf32>
    %13 = vector.shape_cast %12 : vector<2xf32> to vector<2x1xf32>
    %14 = vector.broadcast %13 : vector<2x1xf32> to vector<2x16xf32>
    %15 = arith.divf %11, %14 : vector<2x16xf32>
    %c0_8 = arith.constant 0 : index
    %c0_9 = arith.constant 0 : index
    %16 = vector.load %arg3[%c0_8, %c0_9] : memref<2x16xf32, #tpu.memory_space<vmem>>, vector<2x16xf32>
    tpu.vector_store %arg3[%c0_8, %c0_9], %15 {strides = array<i32>} : memref<2x16xf32, #tpu.memory_space<vmem>>, vector<2x16xf32>,
    return
  }
}

</mosaic_0001>

<bundles_post_ra>
// kernel: biggan_latent_forward.1
= control target key start
LH: loop header
LB: loop body
LE: loop exit
PB: predicated region body
PF: predicated region fallthrough
CT: control target
= control target key end

     0   :  { %9 = vsyncpa [#allocation3], 0  ;;  %s219_s0 = inlined_call_operand.hbm [shape: f32[2,128], index: 0, kind: input, shape index: {}]   ;;  %s220_s1 = inlined_call_operand.vmem [shape: f32[2,16], index: 1, kind: input, shape index: {}]   ;;  %s221_s2 = inlined_call_operand.hbm [shape: f32[2,128], index: 2, kind: output, shape index: {0}]   ;;  %s222_s3 = inlined_call_operand.hbm [shape: f32[2,16], index: 3, kind: output, shape index: {1}]  }
   0x1   :  { %10 = vsyncpa [#allocation4], 0 }
   0x2   :  { %11 = vsyncpa [#allocation7], 0  ;;  %s154_s12 = smov [#allocation2]   ;;  %s82_s16 = scalar_lea.hbm %s219_s0, 32 }
   0x3   :  { %s18_s13 = sshll.u32 %s154_s12, 4  ;;  %p83_p0 = scmp.ne.s32.totalorder %s219_s0, %s82_s16  ;;  %s19_s13 = int_to_ptr.vmem [resolvable:$true] %s18_s13 }
   0x4   :  { %p86_p1 = scmp.lt.u32.totalorder %s82_s16, %s219_s0 }
   0x6   :  { %p88_p2 = pnand %p86_p1, %p83_p0 }
   0x8   :  { %91 = shalt.err (!%p88_p2)
}
   0x9   :  { %s92_s21 = scalar_lea.vmem %s19_s13, 32  ;;  %p97_p4 = scmp.lt.s32.totalorder %s19_s13, %s19_s13 }
   0xa   :  { %p93_p3 = scmp.ne.s32.totalorder %s19_s13, %s92_s21  ;;  %p98_p5 = scmp.lt.s32.totalorder %s92_s21, %s92_s21 }
   0xc   :  { %p99_p6 = por %p98_p5, %p97_p4 }
   0xe   :  { %p100_p7 = pnand %p99_p6, %p93_p3 }
  0x10   :  { %103 = shalt.err (!%p100_p7)
}
  0x11   :  { %21 = dma.hbm_to_vmem [thread:$0]  %s219_s0, 32, %s19_s13, [#allocation3]  }
  0x12   :  { %148 = dma.done.wait [#allocation3], 32  }
  0x13   :  { %149 = vsyncadd [#allocation3], 4294967264  ;;  %vm32_vm0 = vcmask 123904   ;;  %v31_v0 = vld [vmem:[%s220_s1] sm:$0x3]  ;;  %s155_s0 = smov [#allocation5]  }
  0x14   :  { %v33_v1 = vsel %vm32_vm0, %v31_v0, -inf  ;;  %v27_v7 = vld [vmem:[#allocation2] sm:$0x3]  ;;  %s51_s26 = sshll.u32 %s155_s0, 4  ;;  %s52_s26 = int_to_ptr.vmem [resolvable:$true] %s51_s26 }
  0x15   :  { %34 = vmax.xlane.f32.xlu0 %v33_v1  ;;  %v74_v8 = vclamps-f32 %v27_v7, 2.0  ;;  %s104_s27 = scalar_lea.vmem %s52_s26, 32  ;;  %p109_p9 = scmp.lt.s32.totalorder %s52_s26, %s52_s26 }
  0x16   :  { %p105_p8 = scmp.ne.s32.totalorder %s52_s26, %s104_s27  ;;  %p110_p10 = scmp.lt.s32.totalorder %s104_s27, %s104_s27 }
  0x17   :  { %30 = vst [vmem:[#allocation5] sm:$0x3] %v74_v8 }
  0x18   :  { %p111_p11 = por %p110_p10, %p109_p9 }
  0x1a   :  { %p112_p12 = pnand %p111_p11, %p105_p8 }
  0xa2   :  { %v35_v2 = vpop.xlane.xlu0 %34 }
  0xa3   :  { %v36_v3 = vsub.f32 %v31_v0, %v35_v2 }
  0xa5   :  { %v37_v4 = vmul.f32 1.442695, %v36_v3 }
  0xa7   :  { %78 = vpow2.f32 %v37_v4 }
  0xb1   :  { %v79_v5 = vpop.eup %78 }
  0xb2   :  { %v39_v6 = vsel %vm32_vm0, %v79_v5, 0.0 }
  0xb3   :  { %40 = vadd.xlane.f32.xlu0 %v39_v6 }
  0xb4   :  { %115 = shalt.err (!%p112_p12)
}
  0xb5   :  { %s116_s29 = scalar_lea.hbm %s221_s2, 32 }
  0xb6   :  { %p117_p13 = scmp.ne.s32.totalorder %s221_s2, %s116_s29  ;;  %p120_p0 = scmp.lt.u32.totalorder %s116_s29, %s221_s2 }
  0xb8   :  { %p122_p1 = pnand %p120_p0, %p117_p13 }
  0xba   :  { %125 = shalt.err (!%p122_p1)
}
  0xbb   :  { %54 = dma.vmem_to_hbm [thread:$0]  %s52_s26, 32, %s221_s2, [#allocation4]  }
  0xbc   :  { %s156_s9 = smov [#allocation6]  }
  0xbd   :  { %s61_s10 = sshll.u32 %s156_s9, 4  ;;  %s62_s10 = int_to_ptr.vmem [resolvable:$true] %s61_s10 }
  0xbe   :  { %s126_s11 = scalar_lea.vmem %s62_s10, 32  ;;  %p131_p3 = scmp.lt.s32.totalorder %s62_s10, %s62_s10 }
  0xbf   :  { %p127_p2 = scmp.ne.s32.totalorder %s62_s10, %s126_s11  ;;  %p132_p4 = scmp.lt.s32.totalorder %s126_s11, %s126_s11 }
  0xc1   :  { %p133_p5 = por %p132_p4, %p131_p3 }
  0xc3   :  { %p134_p6 = pnand %p133_p5, %p127_p2 }
 0x140   :  { %v41_v9 = vpop.xlane.xlu0 %40 }
 0x141   :  { %80 = vrcp.f32 %v41_v9 }
 0x14b   :  { %v81_v10 = vpop.eup %80 }
 0x14c   :  { %v43_v11 = vmul.f32 %v81_v10, %v79_v5 }
 0x14e   :  { %44 = vst.msk [vmem:[#allocation6] sm:$0x3] %vm32_vm0, %v43_v11 }
 0x14f   :  { %137 = shalt.err (!%p134_p6)
}
 0x150   :  { %s138_s2 = scalar_lea.hbm %s222_s3, 32 }
 0x151   :  { %p139_p7 = scmp.ne.s32.totalorder %s222_s3, %s138_s2  ;;  %p142_p8 = scmp.lt.u32.totalorder %s138_s2, %s222_s3 }
 0x153   :  { %p144_p9 = pnand %p142_p8, %p139_p7 }
 0x155   :  { %147 = shalt.err (!%p144_p9)
}
 0x156   :  { %64 = dma.vmem_to_hbm [thread:$0]  %s62_s10, 32, %s222_s3, [#allocation7]  }
 0x157   :  { %150 = dma.done.wait [#allocation4], 32  }
 0x158   :  { %151 = vsyncadd [#allocation4], 4294967264 }
 0x159   :  { %152 = dma.done.wait [#allocation7], 32  }
 0x15a   :  { %153 = vsyncadd [#allocation7], 4294967264 }
 0x15b   :  { %71 = vsyncpa [#allocation3], 1 }
 0x15c   :  { %72 = vsyncpa [#allocation4], 1 }
 0x15d   :  { %73 = vsyncpa [#allocation7], 1 }

</bundles_post_ra>
